<compile_context>
chip_gen: v7x
topology: tpu7x:2x2x1
jax: 0.10.0
libtpu: 0.0.40
codegen_flags: <defaults>
</compile_context>

<pallas_src>
import functools

import jax
import jax.numpy as jnp
from jax.experimental import pallas as pl
from jax.experimental.pallas import tpu as pltpu

NEG_SLOPE = 0.01   # nn.LeakyReLU default
BN_EPS = 1e-5      # nn.BatchNorm1d default


def _leaky_relu(x):
    return jnp.where(x >= 0, x, NEG_SLOPE * x)


def _batchnorm_train(x):
    # Training-mode BatchNorm1d (gamma=1, beta=0): whole-batch stats, biased
    # variance.  Two-pass form kept for exact agreement with torch BN.
    mean = jnp.mean(x, axis=0, keepdims=True)
    var = jnp.mean((x - mean) * (x - mean), axis=0, keepdims=True)
    return (x - mean) * jax.lax.rsqrt(var + BN_EPS)


def statistical_matching_kernel(states_ref, xmr_ref, wm_ref, w_ref, b_ref,
                                out_ref, *, num_intervals, num_nets,
                                k_mr, o_w2, k2, o_w3, k3):
    """Fully fused forward on a single VMEM-resident batch block.

    states_ref: (N, 2)   raw states
    xmr_ref:    (N, 2C)  [mu | rho] concat
    wm_ref:     (1, C)   flattened weight_matrix
    w_ref:      (rows,W) packed weight slab [W1_mr ; W2_blkdiag ; W3_blkdiag]
    b_ref:      (4, W)   [W1_idx_row ; b1 ; b2 ; b3]  (W3/b3 cols zero-padded)
    out_ref:    (N, 1)   ensemble-mean output
    """
    ni = float(num_intervals)
    n = states_ref.shape[0]
    num_cells = wm_ref.shape[1]

    # ---- fused glue: states_to_cell / cells_to_index + weight_matrix gather --
    s = states_ref[...]                                         # (N, 2)
    xc = jnp.clip(jnp.floor(s[:, 0:1] * ni), 0.0, ni - 1.0)
    yc = jnp.clip(jnp.floor(s[:, 1:2] * ni), 0.0, ni - 1.0)
    idx_f = xc * ni + yc                                        # (N, 1) f32
    idx_i = idx_f.astype(jnp.int32)
    cell_ids = jax.lax.broadcasted_iota(jnp.int32, (n, num_cells), 1)
    wvec = jnp.sum(jnp.where(cell_ids == idx_i, wm_ref[...], 0.0),
                   axis=1, keepdims=True)                       # (N, 1)

    # ---- static slab views (row offsets are compile-time constants) ---------
    w1_mr = w_ref[0:k_mr, :]
    w2 = w_ref[o_w2:o_w2 + k2, :]
    w3 = w_ref[o_w3:o_w3 + k3, :]
    b_all = b_ref[...]                                          # (4, W)
    w1_idx = b_all[0:1, :]
    b1 = b_all[1:2, :]
    b2 = b_all[2:3, :]
    b3 = b_all[3:4, :]

    # ---- layer 1: one MXU push for [mu|rho], idx feature via VPU broadcast ---
    h = (idx_f * w1_idx
         + jnp.dot(xmr_ref[...], w1_mr, preferred_element_type=jnp.float32)
         + b1)
    h = _batchnorm_train(_leaky_relu(h))

    # ---- layer 2: block-diagonal packed weights (all nets in one push) -------
    h = jnp.dot(h, w2, preferred_element_type=jnp.float32) + b2
    h = _batchnorm_train(_leaky_relu(h))

    # ---- layer 3 + CustomClampLayer(0, 1) + weight_matrix scaling + mean -----
    o = jnp.dot(h, w3, preferred_element_type=jnp.float32) + b3
    o = jnp.clip(o, 0.0, 1.0)          # padded (zero) columns stay exactly 0
    out_ref[...] = jnp.sum(o, axis=1, keepdims=True) * (wvec * (1.0 / num_nets))


def pack_ensemble_params(params, num_cells):
    """Pack per-net parameters into two slabs (done once, outside the kernel).

    Features stay grouped per net (net0 cols, net1 cols, ...), so per-feature
    BatchNorm statistics are unchanged by the packing.
    """
    w1, b1, w2, b2, w3, b3 = params
    num_nets, in_dim, h1 = w1.shape
    h2 = w2.shape[2]
    assert in_dim == 2 * num_cells + 1
    width = num_nets * max(h1, h2)

    def pad_cols(a):
        return jnp.pad(a, ((0, 0), (0, width - a.shape[1])))

    def pad_rows8(a):
        r = (-a.shape[0]) % 8
        return jnp.pad(a, ((0, r), (0, 0))) if r else a

    # W1: concat output columns of all nets -> (in_dim, num_nets*h1); split the
    # state-index row (VPU path) from the [mu|rho] rows (MXU path).
    w1p = jnp.concatenate([w1[j] for j in range(num_nets)], axis=1)
    w1_idx = pad_cols(w1p[0:1, :])
    w1_mr = pad_cols(w1p[1:, :])

    # W2 / W3: block-diagonal so one matmul serves every net.
    w2p = pad_cols(jax.scipy.linalg.block_diag(*[w2[j] for j in range(num_nets)]))
    w3p = pad_cols(jax.scipy.linalg.block_diag(*[w3[j] for j in range(num_nets)]))

    b1p = pad_cols(jnp.concatenate([b1[j] for j in range(num_nets)], axis=1))
    b2p = pad_cols(jnp.concatenate([b2[j] for j in range(num_nets)], axis=1))
    b3p = pad_cols(jnp.concatenate([b3[j] for j in range(num_nets)], axis=1))

    blk1, blk2, blk3 = pad_rows8(w1_mr), pad_rows8(w2p), pad_rows8(w3p)
    k_mr = w1_mr.shape[0]
    o_w2 = blk1.shape[0]
    k2 = w2p.shape[0]
    o_w3 = o_w2 + blk2.shape[0]
    k3 = w3p.shape[0]

    w_slab = jnp.concatenate([blk1, blk2, blk3], axis=0).astype(jnp.float32)
    b_slab = jnp.concatenate([w1_idx, b1p, b2p, b3p], axis=0).astype(jnp.float32)
    layout = (k_mr, o_w2, k2, o_w3, k3)        # static ints for the kernel
    return w_slab, b_slab, layout


def statistical_matching_forward(states, mu_available, rho, w_slab, b_slab,
                                 weight_matrix, *, num_intervals, num_nets,
                                 layout):
    # Only cheap, fusable prep stays in the wrapper: the [mu|rho] concat and
    # flattening the weight matrix.  Everything else (bucketize, gather,
    # ensemble mean) is inside the single pallas_call.
    xmr = jnp.concatenate([mu_available, rho], axis=1).astype(jnp.float32)
    wm_flat = weight_matrix.reshape(1, -1).astype(jnp.float32)
    n = states.shape[0]
    k_mr, o_w2, k2, o_w3, k3 = layout

    kernel = functools.partial(
        statistical_matching_kernel,
        num_intervals=num_intervals, num_nets=num_nets,
        k_mr=k_mr, o_w2=o_w2, k2=k2, o_w3=o_w3, k3=k3)

    vmem = pl.BlockSpec(memory_space=pltpu.MemorySpace.VMEM)
    return pl.pallas_call(
        kernel,
        out_shape=jax.ShapeDtypeStruct((n, 1), jnp.float32),
        in_specs=[vmem] * 5,
        out_specs=vmem,
    )(states.astype(jnp.float32), xmr, wm_flat, w_slab, b_slab)


def init_params(key, in_dim, hidden_dims, num_nets):
    """Deterministic init mimicking nn_initialization.

    Hidden Linear layers (followed by LeakyReLU): kaiming_uniform fan_in,
    gain=sqrt(2) -> bound = sqrt(2) * sqrt(3 / fan_in).
    Final Linear (followed by clamp): xavier_uniform ->
    bound = sqrt(6 / (fan_in + fan_out)). All biases zero.
    Weights stored (in_dim, out_dim) so the kernel computes x @ W.
    """
    h1, h2 = hidden_dims
    out_dim = 1
    k1, k2, k3 = jax.random.split(key, 3)

    b_kaiming1 = (2.0 ** 0.5) * (3.0 / in_dim) ** 0.5
    b_kaiming2 = (2.0 ** 0.5) * (3.0 / h1) ** 0.5
    b_xavier = (6.0 / (h2 + out_dim)) ** 0.5

    w1 = jax.random.uniform(k1, (num_nets, in_dim, h1), jnp.float32,
                            -b_kaiming1, b_kaiming1)
    w2 = jax.random.uniform(k2, (num_nets, h1, h2), jnp.float32,
                            -b_kaiming2, b_kaiming2)
    w3 = jax.random.uniform(k3, (num_nets, h2, out_dim), jnp.float32,
                            -b_xavier, b_xavier)
    b1 = jnp.zeros((num_nets, 1, h1), jnp.float32)
    b2 = jnp.zeros((num_nets, 1, h2), jnp.float32)
    b3 = jnp.zeros((num_nets, 1, out_dim), jnp.float32)
    return w1, b1, w2, b2, w3, b3


def _reference_forward(states, mu, rho, params, weight_matrix, num_intervals):
    """Pure-JAX per-net reference (unpacked) for a sanity check."""
    w1, b1, w2, b2, w3, b3 = params
    num_nets = w1.shape[0]
    ni = num_intervals
    xc = jnp.clip(jnp.floor(states[:, 0] * ni), 0, ni - 1)
    yc = jnp.clip(jnp.floor(states[:, 1] * ni), 0, ni - 1)
    idx = (xc * ni + yc).astype(jnp.int32)
    x = jnp.concatenate([idx.astype(jnp.float32)[:, None], mu, rho], axis=1)
    wvec = weight_matrix.reshape(-1)[idx][:, None]
    outs = []
    for j in range(num_nets):
        h = x @ w1[j] + b1[j]
        h = _batchnorm_train(_leaky_relu(h))
        h = h @ w2[j] + b2[j]
        h = _batchnorm_train(_leaky_relu(h))
        o = jnp.clip(h @ w3[j] + b3[j], 0.0, 1.0) * wvec
        outs.append(o)
    return jnp.mean(jnp.stack(outs, axis=0), axis=0)


if __name__ == "__main__":
    # Small, module-consistent shapes: state_dim=2, num_cells=16 (4x4 grid),
    # input_type='grid' -> in_dim = 2*num_cells + 1 = 33, hidden_dims=[16,16].
    key = jax.random.PRNGKey(0)
    state_dim = 2
    num_intervals = 4
    num_cells = num_intervals ** 2
    batch = 64
    hidden_dims = [16, 16]
    num_nets = 2
    in_dim = 2 * num_cells + 1

    ks = jax.random.split(key, 5)
    states = jax.random.uniform(ks[0], (batch, state_dim), jnp.float32)
    mu = jax.random.uniform(ks[1], (batch, num_cells), jnp.float32)
    mu = mu / mu.sum(axis=1, keepdims=True)
    rho = jax.random.uniform(ks[2], (batch, num_cells), jnp.float32)
    rho = rho / rho.sum(axis=1, keepdims=True)
    weight_matrix = jax.random.uniform(ks[3], (num_intervals, num_intervals),
                                       jnp.float32)

    params = init_params(ks[4], in_dim, hidden_dims, num_nets)
    w_slab, b_slab, layout = pack_ensemble_params(params, num_cells)

    fwd = jax.jit(statistical_matching_forward,
                  static_argnames=("num_intervals", "num_nets", "layout"))
    out = fwd(states, mu, rho, w_slab, b_slab, weight_matrix,
              num_intervals=num_intervals, num_nets=num_nets, layout=layout)
    out = jax.block_until_ready(out)

    assert out.shape == (batch, 1) and out.dtype == jnp.float32
    assert bool(jnp.all(jnp.isfinite(out)))
    # clamp(0,1), scale by weight_matrix entries in [0,1), mean over nets
    # => every output must lie in [0, 1].
    assert bool(jnp.all((out >= 0.0) & (out <= 1.0)))

    # Loose sanity check vs. an unpacked pure-JAX reference (loose tolerance
    # to stay robust to XLA's default f32 matmul precision on TPU).
    ref = _reference_forward(states, mu, rho, params, weight_matrix,
                             num_intervals)
    assert bool(jnp.all(jnp.abs(out - ref) < 2e-2))

    print("KERNEL_OK")
</pallas_src>

<mosaic_0001>
module attributes {stable_mosaic.version = 11 : i64} {
  func.func @statistical_matching_kernel(%arg0: memref<64x2xf32, #tpu.memory_space<vmem>>, %arg1: memref<64x32xf32, #tpu.memory_space<vmem>>, %arg2: memref<1x16xf32, #tpu.memory_space<vmem>>, %arg3: memref<96x32xf32, #tpu.memory_space<vmem>>, %arg4: memref<4x32xf32, #tpu.memory_space<vmem>>, %arg5: memref<64x1xf32, #tpu.memory_space<vmem>>) attributes {dimension_semantics = [], scalar_prefetch = 0 : i64, scratch_operands = 0 : i64, tpu.core_type = #tpu.core_type<tc>} {
    %c0 = arith.constant 0 : index
    %c0_0 = arith.constant 0 : index
    %0 = vector.load %arg0[%c0, %c0_0] : memref<64x2xf32, #tpu.memory_space<vmem>>, vector<64x2xf32>
    %1 = vector.extract_strided_slice %0 {offsets = [0, 0], sizes = [64, 1], strides = [1, 1]} : vector<64x2xf32> to vector<64x1xf32>
    %cst = arith.constant 4.000000e+00 : f32
    %2 = vector.broadcast %cst : f32 to vector<64x1xf32>
    %3 = arith.mulf %1, %2 : vector<64x1xf32>
    %4 = math.floor %3 : vector<64x1xf32>
    %cst_1 = arith.constant 0.000000e+00 : f32
    %cst_2 = arith.constant 3.000000e+00 : f32
    %5 = vector.broadcast %cst_1 : f32 to vector<64x1xf32>
    %6 = arith.maximumf %5, %4 : vector<64x1xf32>
    %7 = vector.broadcast %cst_2 : f32 to vector<64x1xf32>
    %8 = arith.minimumf %7, %6 : vector<64x1xf32>
    %9 = vector.extract_strided_slice %0 {offsets = [0, 1], sizes = [64, 1], strides = [1, 1]} : vector<64x2xf32> to vector<64x1xf32>
    %cst_3 = arith.constant 4.000000e+00 : f32
    %10 = vector.broadcast %cst_3 : f32 to vector<64x1xf32>
    %11 = arith.mulf %9, %10 : vector<64x1xf32>
    %12 = math.floor %11 : vector<64x1xf32>
    %cst_4 = arith.constant 0.000000e+00 : f32
    %cst_5 = arith.constant 3.000000e+00 : f32
    %13 = vector.broadcast %cst_4 : f32 to vector<64x1xf32>
    %14 = arith.maximumf %13, %12 : vector<64x1xf32>
    %15 = vector.broadcast %cst_5 : f32 to vector<64x1xf32>
    %16 = arith.minimumf %15, %14 : vector<64x1xf32>
    %cst_6 = arith.constant 4.000000e+00 : f32
    %17 = vector.broadcast %cst_6 : f32 to vector<64x1xf32>
    %18 = arith.mulf %8, %17 : vector<64x1xf32>
    %19 = arith.addf %18, %16 : vector<64x1xf32>
    %20 = arith.fptosi %19 : vector<64x1xf32> to vector<64x1xi32>
    %21 = tpu.iota {dimensions = array<i32: 1>} : vector<64x16xi32>
    %22 = vector.broadcast %20 : vector<64x1xi32> to vector<64x16xi32>
    %23 = arith.cmpi eq, %21, %22 : vector<64x16xi32>
    %c0_7 = arith.constant 0 : index
    %c0_8 = arith.constant 0 : index
    %24 = vector.load %arg2[%c0_7, %c0_8] : memref<1x16xf32, #tpu.memory_space<vmem>>, vector<1x16xf32>
    %cst_9 = arith.constant 0.000000e+00 : f32
    %25 = vector.shape_cast %24 : vector<1x16xf32> to vector<1x16xf32>
    %26 = vector.broadcast %25 : vector<1x16xf32> to vector<64x16xf32>
    %27 = vector.broadcast %cst_9 : f32 to vector<64x16xf32>
    %28 = arith.select %23, %26, %27 : vector<64x16xi1>, vector<64x16xf32>
    %cst_10 = arith.constant dense<0.000000e+00> : vector<64xf32>
    %29 = vector.multi_reduction <add>, %28, %cst_10 [1] : vector<64x16xf32> to vector<64xf32>
    %30 = vector.shape_cast %29 : vector<64xf32> to vector<64x1xf32>
    %c0_11 = arith.constant 0 : index
    %c0_12 = arith.constant 0 : index
    %31 = vector.load %arg3[%c0_11, %c0_12] : memref<96x32xf32, #tpu.memory_space<vmem>>, vector<32x32xf32>
    %c32 = arith.constant 32 : index
    %c0_13 = arith.constant 0 : index
    %32 = vector.load %arg3[%c32, %c0_13] : memref<96x32xf32, #tpu.memory_space<vmem>>, vector<32x32xf32>
    %c64 = arith.constant 64 : index
    %c0_14 = arith.constant 0 : index
    %33 = vector.load %arg3[%c64, %c0_14] : memref<96x32xf32, #tpu.memory_space<vmem>>, vector<32x32xf32>
    %c0_15 = arith.constant 0 : index
    %c0_16 = arith.constant 0 : index
    %34 = vector.load %arg4[%c0_15, %c0_16] : memref<4x32xf32, #tpu.memory_space<vmem>>, vector<4x32xf32>
    %35 = vector.extract_strided_slice %34 {offsets = [0, 0], sizes = [1, 32], strides = [1, 1]} : vector<4x32xf32> to vector<1x32xf32>
    %36 = vector.extract_strided_slice %34 {offsets = [1, 0], sizes = [1, 32], strides = [1, 1]} : vector<4x32xf32> to vector<1x32xf32>
    %37 = vector.extract_strided_slice %34 {offsets = [2, 0], sizes = [1, 32], strides = [1, 1]} : vector<4x32xf32> to vector<1x32xf32>
    %38 = vector.extract_strided_slice %34 {offsets = [3, 0], sizes = [1, 32], strides = [1, 1]} : vector<4x32xf32> to vector<1x32xf32>
    %39 = vector.broadcast %19 : vector<64x1xf32> to vector<64x32xf32>
    %40 = vector.broadcast %35 : vector<1x32xf32> to vector<64x32xf32>
    %41 = arith.mulf %39, %40 : vector<64x32xf32>
    %c0_17 = arith.constant 0 : index
    %c0_18 = arith.constant 0 : index
    %42 = vector.load %arg1[%c0_17, %c0_18] : memref<64x32xf32, #tpu.memory_space<vmem>>, vector<64x32xf32>
    %cst_19 = arith.constant dense<0.000000e+00> : vector<64x32xf32>
    %43 = tpu.matmul %42, %31, %cst_19 {dimension_numbers = #tpu.dot_dimension_numbers<[1], [0], [0], [1], [0, 0, 1, 1], [], []>} : vector<64x32xf32>, vector<32x32xf32>, vector<64x32xf32> -> vector<64x32xf32>
    %44 = arith.addf %41, %43 : vector<64x32xf32>
    %45 = vector.broadcast %36 : vector<1x32xf32> to vector<64x32xf32>
    %46 = arith.addf %44, %45 : vector<64x32xf32>
    %cst_20 = arith.constant 0.000000e+00 : f32
    %47 = vector.broadcast %cst_20 : f32 to vector<64x32xf32>
    %48 = arith.cmpf oge, %46, %47 : vector<64x32xf32>
    %cst_21 = arith.constant 0.00999999977 : f32
    %49 = vector.broadcast %cst_21 : f32 to vector<64x32xf32>
    %50 = arith.mulf %49, %46 : vector<64x32xf32>
    %51 = arith.select %48, %46, %50 : vector<64x32xi1>, vector<64x32xf32>
    %cst_22 = arith.constant dense<0.000000e+00> : vector<32xf32>
    %52 = vector.multi_reduction <add>, %51, %cst_22 [0] : vector<64x32xf32> to vector<32xf32>
    %53 = vector.shape_cast %52 : vector<32xf32> to vector<1x32xf32>
    %cst_23 = arith.constant 6.400000e+01 : f32
    %54 = vector.broadcast %cst_23 : f32 to vector<1x32xf32>
    %55 = arith.divf %53, %54 : vector<1x32xf32>
    %56 = vector.broadcast %55 : vector<1x32xf32> to vector<64x32xf32>
    %57 = arith.subf %51, %56 : vector<64x32xf32>
    %58 = vector.broadcast %55 : vector<1x32xf32> to vector<64x32xf32>
    %59 = arith.subf %51, %58 : vector<64x32xf32>
    %60 = arith.mulf %57, %59 : vector<64x32xf32>
    %cst_24 = arith.constant dense<0.000000e+00> : vector<32xf32>
    %61 = vector.multi_reduction <add>, %60, %cst_24 [0] : vector<64x32xf32> to vector<32xf32>
    %62 = vector.shape_cast %61 : vector<32xf32> to vector<1x32xf32>
    %cst_25 = arith.constant 6.400000e+01 : f32
    %63 = vector.broadcast %cst_25 : f32 to vector<1x32xf32>
    %64 = arith.divf %62, %63 : vector<1x32xf32>
    %65 = vector.broadcast %55 : vector<1x32xf32> to vector<64x32xf32>
    %66 = arith.subf %51, %65 : vector<64x32xf32>
    %cst_26 = arith.constant 9.99999974E-6 : f32
    %67 = vector.broadcast %cst_26 : f32 to vector<1x32xf32>
    %68 = arith.addf %64, %67 : vector<1x32xf32>
    %69 = math.rsqrt %68 : vector<1x32xf32>
    %70 = vector.broadcast %69 : vector<1x32xf32> to vector<64x32xf32>
    %71 = arith.mulf %66, %70 : vector<64x32xf32>
    %cst_27 = arith.constant dense<0.000000e+00> : vector<64x32xf32>
    %72 = tpu.matmul %71, %32, %cst_27 {dimension_numbers = #tpu.dot_dimension_numbers<[1], [0], [0], [1], [0, 0, 1, 1], [], []>} : vector<64x32xf32>, vector<32x32xf32>, vector<64x32xf32> -> vector<64x32xf32>
    %73 = vector.broadcast %37 : vector<1x32xf32> to vector<64x32xf32>
    %74 = arith.addf %72, %73 : vector<64x32xf32>
    %cst_28 = arith.constant 0.000000e+00 : f32
    %75 = vector.broadcast %cst_28 : f32 to vector<64x32xf32>
    %76 = arith.cmpf oge, %74, %75 : vector<64x32xf32>
    %cst_29 = arith.constant 0.00999999977 : f32
    %77 = vector.broadcast %cst_29 : f32 to vector<64x32xf32>
    %78 = arith.mulf %77, %74 : vector<64x32xf32>
    %79 = arith.select %76, %74, %78 : vector<64x32xi1>, vector<64x32xf32>
    %cst_30 = arith.constant dense<0.000000e+00> : vector<32xf32>
    %80 = vector.multi_reduction <add>, %79, %cst_30 [0] : vector<64x32xf32> to vector<32xf32>
    %81 = vector.shape_cast %80 : vector<32xf32> to vector<1x32xf32>
    %cst_31 = arith.constant 6.400000e+01 : f32
    %82 = vector.broadcast %cst_31 : f32 to vector<1x32xf32>
    %83 = arith.divf %81, %82 : vector<1x32xf32>
    %84 = vector.broadcast %83 : vector<1x32xf32> to vector<64x32xf32>
    %85 = arith.subf %79, %84 : vector<64x32xf32>
    %86 = vector.broadcast %83 : vector<1x32xf32> to vector<64x32xf32>
    %87 = arith.subf %79, %86 : vector<64x32xf32>
    %88 = arith.mulf %85, %87 : vector<64x32xf32>
    %cst_32 = arith.constant dense<0.000000e+00> : vector<32xf32>
    %89 = vector.multi_reduction <add>, %88, %cst_32 [0] : vector<64x32xf32> to vector<32xf32>
    %90 = vector.shape_cast %89 : vector<32xf32> to vector<1x32xf32>
    %cst_33 = arith.constant 6.400000e+01 : f32
    %91 = vector.broadcast %cst_33 : f32 to vector<1x32xf32>
    %92 = arith.divf %90, %91 : vector<1x32xf32>
    %93 = vector.broadcast %83 : vector<1x32xf32> to vector<64x32xf32>
    %94 = arith.subf %79, %93 : vector<64x32xf32>
    %cst_34 = arith.constant 9.99999974E-6 : f32
    %95 = vector.broadcast %cst_34 : f32 to vector<1x32xf32>
    %96 = arith.addf %92, %95 : vector<1x32xf32>
    %97 = math.rsqrt %96 : vector<1x32xf32>
    %98 = vector.broadcast %97 : vector<1x32xf32> to vector<64x32xf32>
    %99 = arith.mulf %94, %98 : vector<64x32xf32>
    %cst_35 = arith.constant dense<0.000000e+00> : vector<64x32xf32>
    %100 = tpu.matmul %99, %33, %cst_35 {dimension_numbers = #tpu.dot_dimension_numbers<[1], [0], [0], [1], [0, 0, 1, 1], [], []>} : vector<64x32xf32>, vector<32x32xf32>, vector<64x32xf32> -> vector<64x32xf32>
    %101 = vector.broadcast %38 : vector<1x32xf32> to vector<64x32xf32>
    %102 = arith.addf %100, %101 : vector<64x32xf32>
    %cst_36 = arith.constant 0.000000e+00 : f32
    %cst_37 = arith.constant 1.000000e+00 : f32
    %103 = vector.broadcast %cst_36 : f32 to vector<64x32xf32>
    %104 = arith.maximumf %103, %102 : vector<64x32xf32>
    %105 = vector.broadcast %cst_37 : f32 to vector<64x32xf32>
    %106 = arith.minimumf %105, %104 : vector<64x32xf32>
    %cst_38 = arith.constant dense<0.000000e+00> : vector<64xf32>
    %107 = vector.multi_reduction <add>, %106, %cst_38 [1] : vector<64x32xf32> to vector<64xf32>
    %108 = vector.shape_cast %107 : vector<64xf32> to vector<64x1xf32>
    %cst_39 = arith.constant 5.000000e-01 : f32
    %109 = vector.broadcast %cst_39 : f32 to vector<64x1xf32>
    %110 = arith.mulf %30, %109 : vector<64x1xf32>
    %111 = arith.mulf %108, %110 : vector<64x1xf32>
    %c0_40 = arith.constant 0 : index
    %c0_41 = arith.constant 0 : index
    %112 = vector.load %arg5[%c0_40, %c0_41] : memref<64x1xf32, #tpu.memory_space<vmem>>, vector<64x1xf32>
    tpu.vector_store %arg5[%c0_40, %c0_41], %111 {strides = array<i32>} : memref<64x1xf32, #tpu.memory_space<vmem>>, vector<64x1xf32>,
    return
  }
}

</mosaic_0001>

<bundles_post_ra>
// kernel: statistical_matching_forward.1
= control target key start
LH: loop header
LB: loop body
LE: loop exit
PB: predicated region body
PF: predicated region fallthrough
CT: control target
= control target key end

     0   :  { %v1110_v3 = vmov 0   ;;  %vm263_vm0 = vcmask 261120   ;;  %s1111_s20 = smov 127   ;;  %vm165_vm7 = vcmask 130048   ;;  %s1418_s0 = inlined_call_operand.vmem [shape: f32[64,2], index: 0, kind: input, shape index: {}]   ;;  %s1419_s1 = inlined_call_operand.vmem [shape: f32[64,32], index: 1, kind: input, shape index: {}]   ;;  %s1420_s3 = inlined_call_operand.vmem [shape: f32[96,32], index: 3, kind: input, shape index: {}]   ;;  %s1421_s4 = inlined_call_operand.vmem [shape: f32[4,32], index: 4, kind: input, shape index: {}]   ;;  %s1422_s2 = inlined_call_operand.vmem [shape: f32[1,16], index: 2, kind: input, shape index: {}]   ;;  %s1423_s5 = inlined_call_operand.vmem [shape: f32[64,1], index: 5, kind: output, shape index: {}]  }
   0x1   :  { %v22_v0 = vld [vmem:[%s1418_s0 + $0x10] sm:$0xff]  ;;  %v20_v1 = vld [vmem:[%s1418_s0] sm:$0xff]  ;;  %v23_v2 = vld [vmem:[%s1418_s0 + $0x18] sm:$0xff]  ;;  %1104 = vset.pattern.permute.xlu0 %v1110_v3  ;;  %1105 = vset.pattern.permute.xlu1 %v1110_v3 }
   0x2   :  { %v30_v4 = vmul.f32 4.0, %v22_v0  ;;  %v28_v5 = vmul.f32 4.0, %v20_v1  ;;  %v31_v6 = vmul.f32 4.0, %v23_v2  ;;  %v21_v7 = vld [vmem:[%s1418_s0 + $0x8] sm:$0xff]  ;;  %v27_v9 = vld [vmem:[%s1418_s0 + $0x38] sm:$0xff]  ;;  %v24_v12 = vld [vmem:[%s1418_s0 + $0x20] sm:$0xff] }
   0x3   :  { %v25_v8 = vld [vmem:[%s1418_s0 + $0x28] sm:$0xff]  ;;  %v29_v10 = vmul.f32 4.0, %v21_v7  ;;  %v26_v13 = vld [vmem:[%s1418_s0 + $0x30] sm:$0xff]  ;;  %v32_v17 = vmul.f32 4.0, %v24_v12  ;;  %v35_v20 = vmul.f32 4.0, %v27_v9  ;;  %v255_v22 = vld [vmem:[%s1419_s1] sm:$0xff] }
   0x4   :  { %v33_v11 = vmul.f32 4.0, %v25_v8  ;;  %v38_v14 = vfloor.f32 %v30_v4  ;;  %v36_v15 = vfloor.f32 %v28_v5  ;;  %v39_v16 = vfloor.f32 %v31_v6  ;;  %1006 = vmatprep.mubr.msk.f32.mxu0 %vm263_vm0, %v255_v22  ;;  %v259_v27 = vld [vmem:[%s1419_s1 + $0x20] sm:$0xff]  ;;  %v191_v30 = vld [vmem:[%s1420_s3 + $0x8] sm:$0xff]  ;;  %v192_v33 = vld [vmem:[%s1420_s3 + $0x10] sm:$0xff] }
   0x5   :  { %v37_v18 = vfloor.f32 %v29_v10  ;;  %v34_v21 = vmul.f32 4.0, %v26_v13  ;;  %v40_v26 = vfloor.f32 %v32_v17  ;;  %v190_v29 = vld [vmem:[%s1420_s3] sm:$0xff]  ;;  %1012 = vmatprep.mubr.msk.f32.mxu1 %vm263_vm0, %v259_v27  ;;  %v193_v34 = vld [vmem:[%s1420_s3 + $0x18] sm:$0xff]  ;;  %v43_v36 = vfloor.f32 %v35_v20  ;;  %v256_v47 = vld [vmem:[%s1419_s1 + $0x8] sm:$0xff] }
   0x6   :  { %v41_v19 = vfloor.f32 %v33_v11  ;;  %v1169_v23 = vmax.f32 %v38_v14, 0.0  ;;  %v44_v24 = vmax.f32 %v36_v15, 0.0  ;;  %v47_v25 = vmax.f32 %v39_v16, 0.0  ;;  %v260_v48 = vld [vmem:[%s1419_s1 + $0x28] sm:$0xff]  ;;  %v257_v51 = vld [vmem:[%s1419_s1 + $0x10] sm:$0xff]  ;;  %v258_v53 = vld [vmem:[%s1419_s1 + $0x18] sm:$0xff] }
   0x7   :  { %v45_v28 = vmax.f32 %v37_v18, 0.0  ;;  %v42_v37 = vfloor.f32 %v34_v21  ;;  %v48_v40 = vmax.f32 %v40_v26, 0.0  ;;  %v1058_v41 = vpack.c.bf16 %v191_v30, %v190_v29  ;;  %v261_v52 = vld [vmem:[%s1419_s1 + $0x30] sm:$0xff]  ;;  %v262_v54 = vld [vmem:[%s1419_s1 + $0x38] sm:$0xff] }
   0x8   :  { %v54_v31 = vmin.f32 %v1169_v23, 3.0  ;;  %v52_v32 = vmin.f32 %v44_v24, 3.0  ;;  %v49_v35 = vmax.f32 %v41_v19, 0.0  ;;  %v55_v38 = vmin.f32 %v47_v25, 3.0 }
   0x9   :  { %v53_v39 = vmin.f32 %v45_v28, 3.0  ;;  %v1062_v42 = vpack.c.bf16 %v193_v34, %v192_v33  ;;  %1059 = vmatprep.subr.bf16.mxu0 %v1058_v41  ;;  %1082 = vmatprep.subr.bf16.mxu1 %v1058_v41  ;;  %v51_v44 = vmax.f32 %v43_v36, 0.0  ;;  %v56_v45 = vmin.f32 %v48_v40, 3.0  ;;  %v196_v33 = vld [vmem:[%s1420_s3 + $0x30] sm:$0xff] }
   0xa   :  { %80 = vrot.lane.b32.xlu1 %v54_v31, %s1111_s20  ;;  %76 = vrot.lane.b32.xlu0 %v52_v32, %s1111_s20  ;;  %v57_v43 = vmin.f32 %v49_v35, 3.0  ;;  %v50_v46 = vmax.f32 %v42_v37, 0.0  ;;  %v60_v55 = vmul.f32 4.0, %v52_v32  ;;  %v63_v59 = vmul.f32 4.0, %v55_v38  ;;  %v195_v32 = vld [vmem:[%s1420_s3 + $0x28] sm:$0xff]  ;;  %v197_v35 = vld [vmem:[%s1420_s3 + $0x38] sm:$0xff] }
   0xb   :  { %1061 = vmatpush3.bf16.msra.mxu0 %v1058_v41  ;;  %1084 = vmatpush3.bf16.msra.mxu1 %v1058_v41  ;;  %v59_v49 = vmin.f32 %v51_v44, 3.0  ;;  %v61_v60 = vmul.f32 4.0, %v53_v39  ;;  %v62_v63 = vmul.f32 4.0, %v54_v31  ;;  %v64_v3 = vmul.f32 4.0, %v56_v45  ;;  %v194_v31 = vld [vmem:[%s1420_s3 + $0x20] sm:$0xff] }
   0xc   :  { %1063 = vmatprep.subr.bf16.mxu0 %v1062_v42  ;;  %1083 = vmatprep.subr.bf16.mxu1 %v1062_v42  ;;  %v58_v50 = vmin.f32 %v50_v46, 3.0  ;;  %v65_v2 = vmul.f32 4.0, %v57_v43  ;;  %v1066_v34 = vpack.c.bf16 %v195_v32, %v194_v31  ;;  %v1070_v36 = vpack.c.bf16 %v197_v35, %v196_v33 }
   0xd   :  { %v67_v8 = vmul.f32 4.0, %v59_v49 }
   0xe   :  { %82 = vrot.lane.b32.xlu1 %v55_v38, %s1111_s20  ;;  %78 = vrot.lane.b32.xlu0 %v53_v39, %s1111_s20  ;;  %v66_v10 = vmul.f32 4.0, %v58_v50 }
   0xf   :  { %1065 = vmatpush3.bf16.msra.mxu0 %v1062_v42  ;;  %1085 = vmatpush3.bf16.msra.mxu1 %v1062_v42 }
  0x10   :  { %1067 = vmatprep.subr.bf16.mxu1 %v1066_v34 }
  0x12   :  { %86 = vrot.lane.b32.xlu1 %v57_v43, %s1111_s20  ;;  %84 = vrot.lane.b32.xlu0 %v56_v45, %s1111_s20  ;;  %v116_v45 = vlaneseq }
  0x13   :  { %1007 = vmatmul.mubr.msk.f32.vlgmr.msra.gmra.mrb[0].mxu0 %vm263_vm0, %v256_v47  ;;  %1013 = vmatmul.mubr.msk.f32.vlgmr.msra.gmra.mrb[0].mxu1 %vm263_vm0, %v260_v48  ;;  %v1241_v48 = vld [vmem:[%s1421_s4] sm:$0xf] }
  0x14   :  { %1009 = vmatprep.mubr.msk.f32.mxu0 %vm263_vm0, %v257_v51  ;;  %1015 = vmatprep.mubr.msk.f32.mxu1 %vm263_vm0, %v261_v52  ;;  %v1235_v46 = vshrl.u32 %v116_v45, 7 }
  0x15   :  { %1069 = vmatpush3.bf16.msra.mxu1 %v1066_v34 }
  0x16   :  { %90 = vrot.lane.b32.xlu1 %v59_v49, %s1111_s20  ;;  %88 = vrot.lane.b32.xlu0 %v58_v50, %s1111_s20  ;;  %v245_v47 = vsub.s32 0, %v1235_v46  ;;  %v403_v50 = vsub.s32 1, %v1235_v46 }
  0x17   :  { %1010 = vmatmul.mubr.msk.f32.gmra.mrb[2].mxu0 %vm263_vm0, %v258_v53  ;;  %1016 = vmatmul.mubr.msk.f32.gmra.mrb[2].mxu1 %vm263_vm0, %v262_v54 }
  0x18   :  { %1071 = vmatprep.subr.bf16.mxu1 %v1070_v36  ;;  %v246_v49 = vrot.slane %v1241_v48, %v245_v47  ;;  %v1246_v53 = vrot.slane %v1241_v48, %v403_v50 }
  0x19   :  { %1073 = vmatpush3.bf16.msra.mxu1 %v1070_v36 }
  0x7c   :  { %v81_v56 = vpop.permute.xlu1 %80  ;;  %v77_v57 = vpop.permute.xlu0 %76 }
  0x7d   :  { %v100_v58 = vadd.f32 %v77_v57, %v60_v55  ;;  %v102_v6 = vadd.f32 %v81_v56, %v62_v63 }
  0x7f   :  { %205 = vperm.xlu0 %1104, %v100_v58   ;;  %v1086_v16 = vtrunc.f32 %v100_v58  ;;  %v1090_v19 = vtrunc.f32 %v102_v6 }
  0x80   :  { %v83_v61 = vpop.permute.xlu1 %82  ;;  %v79_v62 = vpop.permute.xlu0 %78 }
  0x81   :  { %v103_v0 = vadd.f32 %v83_v61, %v63_v59  ;;  %v101_v1 = vadd.f32 %v79_v62, %v61_v60  ;;  %v1087_v20 = vcvt.f32.s32 %v1086_v16  ;;  %v1091_v23 = vcvt.f32.s32 %v1090_v19 }
  0x83   :  { %210 = vperm.xlu1 %1105, %v101_v1   ;;  %220 = vperm.xlu0 %1104, %v103_v0   ;;  %v1088_v13 = vtrunc.f32 %v101_v1  ;;  %v1092_v17 = vtrunc.f32 %v103_v0 }
  0x84   :  { %v87_v4 = vpop.permute.xlu1 %86  ;;  %v85_v5 = vpop.permute.xlu0 %84 }
  0x85   :  { %v105_v7 = vadd.f32 %v87_v4, %v65_v2  ;;  %v104_v9 = vadd.f32 %v85_v5, %v64_v3  ;;  %v1089_v18 = vcvt.f32.s32 %v1088_v13  ;;  %v1093_v21 = vcvt.f32.s32 %v1092_v17 }
  0x87   :  { %215 = vperm.xlu1 %1105, %v102_v6   ;;  %230 = vperm.xlu0 %1104, %v105_v7   ;;  %v1096_v22 = vtrunc.f32 %v105_v7  ;;  %v1094_v26 = vtrunc.f32 %v104_v9 }
  0x88   :  { %v91_v11 = vpop.permute.xlu1 %90  ;;  %v89_v12 = vpop.permute.xlu0 %88 }
  0x89   :  { %v107_v14 = vadd.f32 %v91_v11, %v67_v8  ;;  %v106_v15 = vadd.f32 %v89_v12, %v66_v10  ;;  %v1097_v24 = vcvt.f32.s32 %v1096_v22  ;;  %v1095_v28 = vcvt.f32.s32 %v1094_v26 }
  0x8b   :  { %225 = vperm.xlu1 %1105, %v104_v9   ;;  %240 = vperm.xlu0 %1104, %v107_v14   ;;  %v1100_v25 = vtrunc.f32 %v107_v14  ;;  %v1098_v29 = vtrunc.f32 %v106_v15 }
  0x8d   :  { %v1101_v27 = vcvt.f32.s32 %v1100_v25  ;;  %v1099_v30 = vcvt.f32.s32 %v1098_v29 }
  0x8f   :  { %235 = vperm.xlu1 %1105, %v106_v15   ;;  %122 = vperm.xlu0 %1104, %v1089_v18   ;;  %v1255_v15 = vand.u32 127, %v116_v45 }
  0x93   :  { %128 = vperm.xlu0 %1104, %v1093_v21   ;;  %119 = vperm.xlu1 %1105, %v1087_v20  }
  0x97   :  { %134 = vperm.xlu0 %1104, %v1097_v24   ;;  %125 = vperm.xlu1 %1105, %v1091_v23   ;;  %v1268_v24 = vld [vmem:[%s1422_s2] ss:$0 sm:$0xff] }
  0x9b   :  { %140 = vperm.xlu0 %1104, %v1101_v27   ;;  %131 = vperm.xlu1 %1105, %v1095_v28  }
  0x9f   :  { %137 = vperm.xlu1 %1105, %v1099_v30  }
  0xe6   :  { %v1008_v37 = vpop.f32.mrb[0].mxu0  ;;  %v1014_v38 = vpop.f32.mrb[0].mxu1 }
  0xe7   :  { %v354_v39 = vpop.f32.mrb[1].mxu0  ;;  %v374_v40 = vpop.f32.mrb[1].mxu1 }
  0xea   :  { %v1011_v41 = vpop.f32.mrb[2].mxu0  ;;  %v1017_v42 = vpop.f32.mrb[2].mxu1 }
  0xeb   :  { %v364_v43 = vpop.f32.mrb[3].mxu0  ;;  %v1233_v44 = vpop.f32.mrb[3].mxu1 }
  0xfe   :  { %v206_v51 = vpop.permute.xlu0 %205 }
  0xff   :  { %v247_v52 = vmul.f32 %v246_v49, %v206_v51 }
 0x101   :  { %v393_v54 = vadd.f32 %v354_v39, %v247_v52 }
 0x102   :  { %v211_v55 = vpop.permute.xlu1 %210  ;;  %v221_v56 = vpop.permute.xlu0 %220 }
 0x103   :  { %v405_v57 = vadd.f32 %v1246_v53, %v393_v54  ;;  %v248_v58 = vmul.f32 %v246_v49, %v211_v55  ;;  %v250_v59 = vmul.f32 %v246_v49, %v221_v56 }
 0x105   :  { %v421_v60 = vmul.f32 0.01, %v405_v57  ;;  %v394_v61 = vadd.f32 %v1008_v37, %v248_v58  ;;  %v396_v62 = vadd.f32 %v1011_v41, %v250_v59  ;;  %vm413_vm1 = vcmp.ge.f32.partialorder %v405_v57, 0.0 }
 0x106   :  { %v216_v63 = vpop.permute.xlu1 %215  ;;  %v231_v0 = vpop.permute.xlu0 %230 }
 0x107   :  { %v406_v1 = vadd.f32 %v1246_v53, %v394_v61  ;;  %v408_v2 = vadd.f32 %v1246_v53, %v396_v62  ;;  %v249_v3 = vmul.f32 %v246_v49, %v216_v63  ;;  %v252_v4 = vmul.f32 %v246_v49, %v231_v0 }
 0x108   :  { %v1251_v5 = vsel %vm413_vm1, %v405_v57, %v421_v60 }
 0x109   :  { %vm414_vm2 = vcmp.ge.f32.partialorder %v406_v1, 0.0  ;;  %v422_v6 = vmul.f32 0.01, %v406_v1  ;;  %v424_v7 = vmul.f32 0.01, %v408_v2  ;;  %vm416_vm3 = vcmp.ge.f32.partialorder %v408_v2, 0.0 }
 0x10a   :  { %v395_v8 = vadd.f32 %v364_v43, %v249_v3  ;;  %v398_v9 = vadd.f32 %v1014_v38, %v252_v4  ;;  %v226_v10 = vpop.permute.xlu1 %225  ;;  %v241_v11 = vpop.permute.xlu0 %240  ;;  %v437_v16 = vsel %vm263_vm0, %v1251_v5, 0.0 }
 0x10b   :  { %v1253_v12 = vsel %vm414_vm2, %v406_v1, %v422_v6  ;;  %v251_v13 = vmul.f32 %v246_v49, %v226_v10  ;;  %v254_v14 = vmul.f32 %v246_v49, %v241_v11  ;;  %v1263_v20 = vsel %vm416_vm3, %v408_v2, %v424_v7 }
 0x10c   :  { %v438_v17 = vsel %vm263_vm0, %v1253_v12, 0.0  ;;  %v407_v18 = vadd.f32 %v1246_v53, %v395_v8  ;;  %v410_v19 = vadd.f32 %v1246_v53, %v398_v9  ;;  %v442_v34 = vsel %vm263_vm0, %v1263_v20, 0.0 }
 0x10d   :  { %v439_v21 = vadd.f32 %v438_v17, %v437_v16  ;;  %v397_v22 = vadd.f32 %v374_v40, %v251_v13  ;;  %v400_v23 = vadd.f32 %v1017_v42, %v254_v14 }
 0x10e   :  { %vm415_vm4 = vcmp.ge.f32.partialorder %v407_v18, 0.0  ;;  %v423_v25 = vmul.f32 0.01, %v407_v18  ;;  %vm418_vm5 = vcmp.ge.f32.partialorder %v410_v19, 0.0  ;;  %v426_v26 = vmul.f32 0.01, %v410_v19  ;;  %v236_v27 = vpop.permute.xlu1 %235  ;;  %v123_v28 = vpop.permute.xlu0 %122 }
 0x10f   :  { %v409_v29 = vadd.f32 %v1246_v53, %v397_v22  ;;  %v412_v30 = vadd.f32 %v1246_v53, %v400_v23  ;;  %v253_v31 = vmul.f32 %v246_v49, %v236_v27  ;;  %vm143_vm6 = vcmp.eq.s32.totalorder %v1255_v15, %v123_v28 }
 0x110   :  { %v1273_v32 = vsel %vm415_vm4, %v407_v18, %v423_v25  ;;  %v158_v33 = vsel %vm143_vm6, %v1268_v24, 0.0  ;;  %v1281_v38 = vsel %vm418_vm5, %v410_v19, %v426_v26 }
 0x111   :  { %v440_v35 = vsel %vm263_vm0, %v1273_v32, 0.0  ;;  %vm417_vm8 = vcmp.ge.f32.partialorder %v409_v29, 0.0  ;;  %v425_v36 = vmul.f32 0.01, %v409_v29  ;;  %vm420_vm9 = vcmp.ge.f32.partialorder %v412_v30, 0.0 }
 0x112   :  { %v441_v37 = vadd.f32 %v440_v35, %v439_v21  ;;  %v399_v39 = vadd.f32 %v1233_v44, %v253_v31  ;;  %v129_v40 = vpop.permute.xlu0 %128  ;;  %v120_v41 = vpop.permute.xlu1 %119  ;;  %v428_v43 = vmul.f32 0.01, %v412_v30  ;;  %v169_v45 = vsel %vm165_vm7, %v158_v33, 0.0 }
 0x113   :  { %v1284_v42 = vsel %vm417_vm8, %v409_v29, %v425_v36  ;;  %vm142_vm10 = vcmp.eq.s32.totalorder %v1255_v15, %v120_v41  ;;  %170 = vadd.xlane.f32.xlu0 %v169_v45  ;;  %vm145_vm11 = vcmp.eq.s32.totalorder %v1255_v15, %v129_v40  ;;  %v446_v57 = vsel %vm263_vm0, %v1281_v38, 0.0 }
 0x114   :  { %v443_v47 = vadd.f32 %v442_v34, %v441_v37  ;;  %v444_v49 = vsel %vm263_vm0, %v1284_v42, 0.0  ;;  %v411_v50 = vadd.f32 %v1246_v53, %v399_v39  ;;  %v157_v44 = vsel %vm142_vm10, %v1268_v24, 0.0 }
 0x115   :  { %v166_v55 = vsel %vm165_vm7, %v157_v44, 0.0  ;;  %v436_v58 = vsel %vm420_vm9, %v412_v30, %v428_v43  ;;  %v160_v53 = vsel %vm145_vm11, %v1268_v24, 0.0  ;;  %vm924_vm11 = vcmask 7168  }
 0x116   :  { %v445_v51 = vadd.f32 %v444_v49, %v443_v47  ;;  %vm419_vm12 = vcmp.ge.f32.partialorder %v411_v50, 0.0  ;;  %v427_v52 = vmul.f32 0.01, %v411_v50  ;;  %v135_v54 = vpop.permute.xlu0 %134  ;;  %v126_v56 = vpop.permute.xlu1 %125  ;;  %167 = vadd.xlane.f32.xlu1 %v166_v55  ;;  %v175_v2 = vsel %vm165_vm7, %v160_v53, 0.0 }
 0x117   :  { %vm144_vm13 = vcmp.eq.s32.totalorder %v1255_v15, %v126_v56  ;;  %vm147_vm14 = vcmp.eq.s32.totalorder %v1255_v15, %v135_v54  ;;  %v450_v4 = vsel %vm263_vm0, %v436_v58, 0.0 }
 0x118   :  { %v435_v59 = vsel %vm419_vm12, %v411_v50, %v427_v52  ;;  %v447_v60 = vadd.f32 %v446_v57, %v445_v51  ;;  %v159_v61 = vsel %vm144_vm13, %v1268_v24, 0.0  ;;  %v162_v6 = vsel %vm147_vm14, %v1268_v24, 0.0 }
 0x119   :  { %v448_v62 = vsel %vm263_vm0, %v435_v59, 0.0  ;;  %v172_v63 = vsel %vm165_vm7, %v159_v61, 0.0  ;;  %v181_v11 = vsel %vm165_vm7, %v162_v6, 0.0 }
 0x11a   :  { %v449_v0 = vadd.f32 %v448_v62, %v447_v60  ;;  %v141_v1 = vpop.permute.xlu0 %140  ;;  %173 = vadd.xlane.f32.xlu0 %v172_v63  ;;  %v132_v3 = vpop.permute.xlu1 %131  ;;  %176 = vadd.xlane.f32.xlu1 %v175_v2 }
 0x11b   :  { %vm146_vm15 = vcmp.eq.s32.totalorder %v1255_v15, %v132_v3  ;;  %vm149_vm1 = vcmp.eq.s32.totalorder %v1255_v15, %v141_v1 }
 0x11c   :  { %v451_v7 = vadd.f32 %v450_v4, %v449_v0  ;;  %v161_v8 = vsel %vm146_vm15, %v1268_v24, 0.0  ;;  %v164_v14 = vsel %vm149_vm1, %v1268_v24, 0.0 }
 0x11d   :  { %v178_v9 = vsel %vm165_vm7, %v161_v8, 0.0  ;;  %v187_v21 = vsel %vm165_vm7, %v164_v14, 0.0  ;;  %v201_v14 = vld [vmem:[%s1420_s3 + $0x58] sm:$0xff] }
 0x11e   :  { %v452_v10 = vrot.slane %v451_v7, 4  ;;  %179 = vadd.xlane.f32.xlu0 %v178_v9  ;;  %v138_v13 = vpop.permute.xlu1 %137  ;;  %182 = vadd.xlane.f32.xlu1 %v181_v11  ;;  %v198_v9 = vld [vmem:[%s1420_s3 + $0x40] sm:$0xff]  ;;  %v200_v11 = vld [vmem:[%s1420_s3 + $0x50] sm:$0xff] }
 0x11f   :  { %vm148_vm2 = vcmp.eq.s32.totalorder %v1255_v15, %v138_v13 }
 0x120   :  { %v453_v16 = vadd.f32 %v452_v10, %v451_v7  ;;  %v163_v17 = vsel %vm148_vm2, %v1268_v24, 0.0  ;;  %v199_v10 = vld [vmem:[%s1420_s3 + $0x48] sm:$0xff] }
 0x121   :  { %v184_v18 = vsel %vm165_vm7, %v163_v17, 0.0  ;;  %v1074_v13 = vpack.c.bf16 %v199_v10, %v198_v9  ;;  %v510_v17 = vsub.s32 2, %v1235_v46 }
 0x122   :  { %v454_v19 = vrot.slane %v453_v16, 2  ;;  %185 = vadd.xlane.f32.xlu0 %v184_v18  ;;  %188 = vadd.xlane.f32.xlu1 %v187_v21 }
 0x123   :  { %1075 = vmatprep.subr.bf16.mxu0 %v1074_v13  ;;  %v511_v18 = vrot.slane %v1241_v48, %v510_v17 }
 0x124   :  { %v455_v22 = vadd.f32 %v454_v19, %v453_v16  ;;  %v1078_v16 = vpack.c.bf16 %v201_v14, %v200_v11  ;;  %1077 = vmatpush3.bf16.msra.mxu0 %v1074_v13 }
 0x126   :  { %v456_v23 = vrot.slane %v455_v22, 1  ;;  %1079 = vmatprep.subr.bf16.mxu0 %v1078_v16 }
 0x128   :  { %v457_v25 = vadd.f32 %v456_v23, %v455_v22  ;;  %1081 = vmatpush3.bf16.msra.mxu0 %v1078_v16 }
 0x12a   :  { %v459_v26 = vmul.f32 0.015625, %v457_v25 }
 0x12c   :  { %v466_v27 = vsub.f32 %v435_v59, %v459_v26  ;;  %v460_v28 = vsub.f32 %v1251_v5, %v459_v26  ;;  %v461_v15 = vsub.f32 %v1253_v12, %v459_v26  ;;  %v462_v29 = vsub.f32 %v1273_v32, %v459_v26 }
 0x12d   :  { %v463_v24 = vsub.f32 %v1263_v20, %v459_v26  ;;  %v464_v30 = vsub.f32 %v1284_v42, %v459_v26  ;;  %v465_v31 = vsub.f32 %v1281_v38, %v459_v26  ;;  %v467_v33 = vsub.f32 %v436_v58, %v459_v26 }
 0x12e   :  { %v468_v34 = vmul.f32 %v460_v28, %v460_v28  ;;  %v469_v35 = vmul.f32 %v461_v15, %v461_v15  ;;  %v470_v36 = vmul.f32 %v462_v29, %v462_v29  ;;  %v474_v45 = vmul.f32 %v466_v27, %v466_v27 }
 0x12f   :  { %v471_v37 = vmul.f32 %v463_v24, %v463_v24  ;;  %v472_v41 = vmul.f32 %v464_v30, %v464_v30  ;;  %v473_v43 = vmul.f32 %v465_v31, %v465_v31  ;;  %v475_v49 = vmul.f32 %v467_v33, %v467_v33 }
 0x130   :  { %v476_v39 = vsel %vm263_vm0, %v468_v34, 0.0  ;;  %v477_v40 = vsel %vm263_vm0, %v469_v35, 0.0  ;;  %v479_v12 = vsel %vm263_vm0, %v470_v36, 0.0  ;;  %v487_v51 = vsel %vm263_vm0, %v474_v45, 0.0 }
 0x131   :  { %v478_v5 = vadd.f32 %v477_v40, %v476_v39  ;;  %v481_v20 = vsel %vm263_vm0, %v471_v37, 0.0  ;;  %v483_v38 = vsel %vm263_vm0, %v472_v41, 0.0  ;;  %v485_v50 = vsel %vm263_vm0, %v473_v43, 0.0 }
 0x132   :  { %v489_v54 = vsel %vm263_vm0, %v475_v49, 0.0 }
 0x133   :  { %v480_v32 = vadd.f32 %v479_v12, %v478_v5 }
 0x135   :  { %v482_v42 = vadd.f32 %v481_v20, %v480_v32 }
 0x137   :  { %v484_v47 = vadd.f32 %v483_v38, %v482_v42 }
 0x139   :  { %v486_v44 = vadd.f32 %v485_v50, %v484_v47 }
 0x13b   :  { %v488_v52 = vadd.f32 %v487_v51, %v486_v44 }
 0x13d   :  { %v490_v55 = vadd.f32 %v489_v54, %v488_v52 }
 0x13f   :  { %v491_v56 = vrot.slane %v490_v55, 4 }
 0x141   :  { %v492_v57 = vadd.f32 %v491_v56, %v490_v55 }
 0x143   :  { %v493_v58 = vrot.slane %v492_v57, 2 }
 0x145   :  { %v494_v53 = vadd.f32 %v493_v58, %v492_v57 }
 0x147   :  { %v495_v59 = vrot.slane %v494_v53, 1 }
 0x149   :  { %v496_v60 = vadd.f32 %v495_v59, %v494_v53 }
 0x14b   :  { %v497_v61 = vmul.f32 0.015625, %v496_v60 }
 0x14d   :  { %v498_v62 = vadd.f32 1e-05, %v497_v61 }
 0x14f   :  { %1106 = vrsqrt.f32 %v498_v62 }
 0x159   :  { %v1107_v63 = vpop.eup %1106 }
 0x15a   :  { %v500_v0 = vmul.f32 %v1107_v63, %v460_v28  ;;  %v501_v1 = vmul.f32 %v1107_v63, %v461_v15  ;;  %v502_v2 = vmul.f32 %v1107_v63, %v462_v29  ;;  %v503_v3 = vmul.f32 %v1107_v63, %v463_v24 }
 0x15b   :  { %v504_v4 = vmul.f32 %v1107_v63, %v464_v30  ;;  %v505_v6 = vmul.f32 %v1107_v63, %v465_v31  ;;  %v506_v7 = vmul.f32 %v1107_v63, %v466_v27  ;;  %v507_v8 = vmul.f32 %v1107_v63, %v467_v33 }
 0x15c   :  { %1026 = vmatprep.mubr.msk.f32.mxu1 %vm263_vm0, %v500_v0 }
 0x15d   :  { %1027 = vmatmul.mubr.msk.f32.vlgmr.msra.gmra.mrb[4].mxu1 %vm263_vm0, %v501_v1 }
 0x15e   :  { %1029 = vmatprep.mubr.msk.f32.mxu1 %vm263_vm0, %v502_v2 }
 0x161   :  { %1030 = vmatmul.mubr.msk.f32.gmra.mrb[6].mxu1 %vm263_vm0, %v503_v3 }
 0x162   :  { %1032 = vmatprep.mubr.msk.f32.mxu1 %vm263_vm0, %v504_v4 }
 0x165   :  { %1033 = vmatmul.mubr.msk.f32.gmra.mrb[8].mxu1 %vm263_vm0, %v505_v6 }
 0x166   :  { %1035 = vmatprep.mubr.msk.f32.mxu1 %vm263_vm0, %v506_v7 }
 0x169   :  { %1036 = vmatmul.mubr.msk.f32.gmra.mrb[10].mxu1 %vm263_vm0, %v507_v8 }
 0x230   :  { %v1028_v19 = vpop.f32.mrb[4].mxu1 }
 0x231   :  { %v608_v21 = vadd.f32 %v1028_v19, %v511_v18  ;;  %v602_v22 = vpop.f32.mrb[5].mxu1 }
 0x232   :  { %v603_v23 = vadd.f32 %v602_v22, %v511_v18 }
 0x233   :  { %vm642_vm3 = vcmp.ge.f32.partialorder %v608_v21, 0.0  ;;  %v650_v25 = vmul.f32 0.01, %v608_v21 }
 0x234   :  { %vm641_vm4 = vcmp.ge.f32.partialorder %v603_v23, 0.0  ;;  %v649_v26 = vmul.f32 0.01, %v603_v23  ;;  %v1031_v27 = vpop.f32.mrb[6].mxu1 }
 0x235   :  { %v658_v28 = vsel %vm642_vm3, %v608_v21, %v650_v25  ;;  %v618_v15 = vadd.f32 %v1031_v27, %v511_v18  ;;  %v612_v29 = vpop.f32.mrb[7].mxu1 }
 0x236   :  { %v666_v24 = vsel %vm263_vm0, %v658_v28, 0.0  ;;  %v657_v30 = vsel %vm641_vm4, %v603_v23, %v649_v26  ;;  %v613_v31 = vadd.f32 %v612_v29, %v511_v18 }
 0x237   :  { %v665_v33 = vsel %vm263_vm0, %v657_v30, 0.0  ;;  %vm644_vm5 = vcmp.ge.f32.partialorder %v618_v15, 0.0  ;;  %v652_v34 = vmul.f32 0.01, %v618_v15 }
 0x238   :  { %v667_v35 = vadd.f32 %v666_v24, %v665_v33  ;;  %vm643_vm6 = vcmp.ge.f32.partialorder %v613_v31, 0.0  ;;  %v651_v36 = vmul.f32 0.01, %v613_v31  ;;  %v1034_v37 = vpop.f32.mrb[8].mxu1 }
 0x239   :  { %v628_v39 = vadd.f32 %v1034_v37, %v511_v18  ;;  %v622_v40 = vpop.f32.mrb[9].mxu1  ;;  %v660_v5 = vsel %vm644_vm5, %v618_v15, %v652_v34 }
 0x23a   :  { %v659_v41 = vsel %vm643_vm6, %v613_v31, %v651_v36  ;;  %v623_v12 = vadd.f32 %v622_v40, %v511_v18  ;;  %v670_v38 = vsel %vm263_vm0, %v660_v5, 0.0 }
 0x23b   :  { %v668_v32 = vsel %vm263_vm0, %v659_v41, 0.0  ;;  %vm646_vm7 = vcmp.ge.f32.partialorder %v628_v39, 0.0  ;;  %v654_v43 = vmul.f32 0.01, %v628_v39 }
 0x23c   :  { %v669_v20 = vadd.f32 %v668_v32, %v667_v35  ;;  %vm645_vm8 = vcmp.ge.f32.partialorder %v623_v12, 0.0  ;;  %v653_v42 = vmul.f32 0.01, %v623_v12  ;;  %v1037_v45 = vpop.f32.mrb[10].mxu1 }
 0x23d   :  { %v638_v47 = vadd.f32 %v1037_v45, %v511_v18  ;;  %v632_v49 = vpop.f32.mrb[11].mxu1  ;;  %v662_v50 = vsel %vm646_vm7, %v628_v39, %v654_v43 }
 0x23e   :  { %v661_v44 = vsel %vm645_vm8, %v623_v12, %v653_v42  ;;  %v671_v51 = vadd.f32 %v670_v38, %v669_v20  ;;  %v633_v52 = vadd.f32 %v632_v49, %v511_v18  ;;  %v674_v58 = vsel %vm263_vm0, %v662_v50, 0.0 }
 0x23f   :  { %v672_v54 = vsel %vm263_vm0, %v661_v44, 0.0  ;;  %vm648_vm9 = vcmp.ge.f32.partialorder %v638_v47, 0.0  ;;  %v656_v55 = vmul.f32 0.01, %v638_v47 }
 0x240   :  { %v673_v56 = vadd.f32 %v672_v54, %v671_v51  ;;  %vm647_vm10 = vcmp.ge.f32.partialorder %v633_v52, 0.0  ;;  %v655_v57 = vmul.f32 0.01, %v633_v52 }
 0x241   :  { %v664_v53 = vsel %vm648_vm9, %v638_v47, %v656_v55 }
 0x242   :  { %v663_v59 = vsel %vm647_vm10, %v633_v52, %v655_v57  ;;  %v675_v60 = vadd.f32 %v674_v58, %v673_v56  ;;  %v678_v63 = vsel %vm263_vm0, %v664_v53, 0.0 }
 0x243   :  { %v676_v61 = vsel %vm263_vm0, %v663_v59, 0.0 }
 0x244   :  { %v677_v62 = vadd.f32 %v676_v61, %v675_v60 }
 0x246   :  { %v679_v0 = vadd.f32 %v678_v63, %v677_v62 }
 0x248   :  { %v680_v1 = vrot.slane %v679_v0, 4 }
 0x24a   :  { %v681_v2 = vadd.f32 %v680_v1, %v679_v0 }
 0x24c   :  { %v682_v3 = vrot.slane %v681_v2, 2 }
 0x24e   :  { %v683_v4 = vadd.f32 %v682_v3, %v681_v2 }
 0x250   :  { %v684_v6 = vrot.slane %v683_v4, 1 }
 0x252   :  { %v685_v7 = vadd.f32 %v684_v6, %v683_v4 }
 0x254   :  { %v686_v8 = vmul.f32 0.015625, %v685_v7 }
 0x256   :  { %v693_v9 = vsub.f32 %v663_v59, %v686_v8  ;;  %v687_v10 = vsub.f32 %v657_v30, %v686_v8  ;;  %v688_v11 = vsub.f32 %v658_v28, %v686_v8  ;;  %v689_v13 = vsub.f32 %v659_v41, %v686_v8 }
 0x257   :  { %v690_v14 = vsub.f32 %v660_v5, %v686_v8  ;;  %v691_v16 = vsub.f32 %v661_v44, %v686_v8  ;;  %v692_v17 = vsub.f32 %v662_v50, %v686_v8  ;;  %v694_v18 = vsub.f32 %v664_v53, %v686_v8 }
 0x258   :  { %v695_v19 = vmul.f32 %v687_v10, %v687_v10  ;;  %v696_v21 = vmul.f32 %v688_v11, %v688_v11  ;;  %v697_v22 = vmul.f32 %v689_v13, %v689_v13  ;;  %v701_v33 = vmul.f32 %v693_v9, %v693_v9 }
 0x259   :  { %v698_v23 = vmul.f32 %v690_v14, %v690_v14  ;;  %v699_v15 = vmul.f32 %v691_v16, %v691_v16  ;;  %v700_v30 = vmul.f32 %v692_v17, %v692_v17  ;;  %v702_v36 = vmul.f32 %v694_v18, %v694_v18 }
 0x25a   :  { %v703_v25 = vsel %vm263_vm0, %v695_v19, 0.0  ;;  %v704_v26 = vsel %vm263_vm0, %v696_v21, 0.0  ;;  %v706_v29 = vsel %vm263_vm0, %v697_v22, 0.0  ;;  %v714_v40 = vsel %vm263_vm0, %v701_v33, 0.0 }
 0x25b   :  { %v705_v27 = vadd.f32 %v704_v26, %v703_v25  ;;  %v708_v28 = vsel %vm263_vm0, %v698_v23, 0.0  ;;  %v710_v34 = vsel %vm263_vm0, %v699_v15, 0.0  ;;  %v712_v37 = vsel %vm263_vm0, %v700_v30, 0.0 }
 0x25c   :  { %v716_v41 = vsel %vm263_vm0, %v702_v36, 0.0  ;;  %v737_v53 = vsub.s32 3, %v1235_v46 }
 0x25d   :  { %v707_v24 = vadd.f32 %v706_v29, %v705_v27 }
 0x25e   :  { %v738_v59 = vrot.slane %v1241_v48, %v737_v53 }
 0x25f   :  { %v709_v31 = vadd.f32 %v708_v28, %v707_v24 }
 0x261   :  { %v711_v35 = vadd.f32 %v710_v34, %v709_v31 }
 0x263   :  { %v713_v39 = vadd.f32 %v712_v37, %v711_v35 }
 0x265   :  { %v715_v5 = vadd.f32 %v714_v40, %v713_v39  ;;  %v168_v39 = vpop.xlane.xlu1 %167  ;;  %v171_v40 = vpop.xlane.xlu0 %170 }
 0x267   :  { %v717_v12 = vadd.f32 %v716_v41, %v715_v5 }
 0x269   :  { %v718_v32 = vrot.slane %v717_v12, 4  ;;  %v177_v5 = vpop.xlane.xlu1 %176  ;;  %v174_v41 = vpop.xlane.xlu0 %173 }
 0x26b   :  { %v719_v43 = vadd.f32 %v718_v32, %v717_v12 }
 0x26d   :  { %v720_v20 = vrot.slane %v719_v43, 2  ;;  %v183_v12 = vpop.xlane.xlu1 %182  ;;  %v180_v32 = vpop.xlane.xlu0 %179 }
 0x26f   :  { %v721_v42 = vadd.f32 %v720_v20, %v719_v43 }
 0x271   :  { %v722_v45 = vrot.slane %v721_v42, 1  ;;  %v189_v43 = vpop.xlane.xlu1 %188  ;;  %v186_v20 = vpop.xlane.xlu0 %185 }
 0x273   :  { %v723_v38 = vadd.f32 %v722_v45, %v721_v42  ;;  %v909_v42 = vmul.f32 0.5, %v171_v40  ;;  %v908_v45 = vmul.f32 0.5, %v168_v39 }
 0x275   :  { %v724_v47 = vmul.f32 0.015625, %v723_v38 }
 0x277   :  { %v725_v49 = vadd.f32 1e-05, %v724_v47 }
 0x279   :  { %1108 = vrsqrt.f32 %v725_v49 }
 0x283   :  { %v1109_v50 = vpop.eup %1108 }
 0x284   :  { %v727_v44 = vmul.f32 %v1109_v50, %v687_v10  ;;  %v728_v51 = vmul.f32 %v1109_v50, %v688_v11  ;;  %v729_v52 = vmul.f32 %v1109_v50, %v689_v13  ;;  %v730_v54 = vmul.f32 %v1109_v50, %v690_v14 }
 0x285   :  { %v731_v55 = vmul.f32 %v1109_v50, %v691_v16  ;;  %v732_v56 = vmul.f32 %v1109_v50, %v692_v17  ;;  %v733_v57 = vmul.f32 %v1109_v50, %v693_v9  ;;  %v734_v58 = vmul.f32 %v1109_v50, %v694_v18 }
 0x286   :  { %1046 = vmatprep.mubr.msk.f32.mxu0 %vm263_vm0, %v727_v44  ;;  %v911_v44 = vmul.f32 0.5, %v177_v5 }
 0x287   :  { %1047 = vmatmul.mubr.msk.f32.vlgmr.msra.gmra.mrb[4].mxu0 %vm263_vm0, %v728_v51  ;;  %v910_v51 = vmul.f32 0.5, %v174_v41 }
 0x288   :  { %1049 = vmatprep.mubr.msk.f32.mxu0 %vm263_vm0, %v729_v52 }
 0x28b   :  { %1050 = vmatmul.mubr.msk.f32.gmra.mrb[6].mxu0 %vm263_vm0, %v730_v54 }
 0x28c   :  { %1052 = vmatprep.mubr.msk.f32.mxu0 %vm263_vm0, %v731_v55 }
 0x28f   :  { %1053 = vmatmul.mubr.msk.f32.gmra.mrb[8].mxu0 %vm263_vm0, %v732_v56 }
 0x290   :  { %1055 = vmatprep.mubr.msk.f32.mxu0 %vm263_vm0, %v733_v57  ;;  %v913_v57 = vmul.f32 0.5, %v183_v12 }
 0x293   :  { %1056 = vmatmul.mubr.msk.f32.gmra.mrb[10].mxu0 %vm263_vm0, %v734_v58  ;;  %v912_v58 = vmul.f32 0.5, %v180_v32 }
 0x35a   :  { %v1048_v60 = vpop.f32.mrb[4].mxu0 }
 0x35b   :  { %v835_v61 = vadd.f32 %v1048_v60, %v738_v59  ;;  %v829_v62 = vpop.f32.mrb[5].mxu0 }
 0x35c   :  { %v830_v63 = vadd.f32 %v829_v62, %v738_v59  ;;  %v915_v62 = vmul.f32 0.5, %v189_v43 }
 0x35d   :  { %v869_v0 = vmax.f32 %v835_v61, 0.0 }
 0x35e   :  { %v868_v1 = vmax.f32 %v830_v63, 0.0  ;;  %v1051_v2 = vpop.f32.mrb[6].mxu0  ;;  %v914_v63 = vmul.f32 0.5, %v186_v20 }
 0x35f   :  { %v877_v3 = vmin.f32 %v869_v0, 1.0  ;;  %v845_v4 = vadd.f32 %v1051_v2, %v738_v59  ;;  %v839_v6 = vpop.f32.mrb[7].mxu0 }
 0x360   :  { %v876_v7 = vmin.f32 %v868_v1, 1.0  ;;  %v840_v8 = vadd.f32 %v839_v6, %v738_v59 }
 0x361   :  { %v871_v9 = vmax.f32 %v845_v4, 0.0  ;;  %v887_v10 = vsel %vm263_vm0, %v877_v3, 0.0 }
 0x362   :  { %v870_v11 = vmax.f32 %v840_v8, 0.0  ;;  %v1054_v13 = vpop.f32.mrb[8].mxu0  ;;  %888 = vadd.xlane.f32.xlu1 %v887_v10  ;;  %v884_v46 = vsel %vm263_vm0, %v876_v7, 0.0 }
 0x363   :  { %v879_v48 = vmin.f32 %v871_v9, 1.0  ;;  %v855_v14 = vadd.f32 %v1054_v13, %v738_v59  ;;  %v849_v16 = vpop.f32.mrb[9].mxu0  ;;  %885 = vadd.xlane.f32.xlu0 %v884_v46 }
 0x364   :  { %v878_v17 = vmin.f32 %v870_v11, 1.0  ;;  %v850_v18 = vadd.f32 %v849_v16, %v738_v59 }
 0x365   :  { %v873_v19 = vmax.f32 %v855_v14, 0.0  ;;  %v893_v21 = vsel %vm263_vm0, %v879_v48, 0.0 }
 0x366   :  { %v872_v22 = vmax.f32 %v850_v18, 0.0  ;;  %v1057_v23 = vpop.f32.mrb[10].mxu0  ;;  %894 = vadd.xlane.f32.xlu1 %v893_v21  ;;  %v890_v25 = vsel %vm263_vm0, %v878_v17, 0.0 }
 0x367   :  { %v881_v26 = vmin.f32 %v873_v19, 1.0  ;;  %v865_v27 = vadd.f32 %v1057_v23, %v738_v59  ;;  %v859_v15 = vpop.f32.mrb[11].mxu0  ;;  %891 = vadd.xlane.f32.xlu0 %v890_v25 }
 0x368   :  { %v880_v29 = vmin.f32 %v872_v22, 1.0  ;;  %v860_v24 = vadd.f32 %v859_v15, %v738_v59 }
 0x369   :  { %v875_v30 = vmax.f32 %v865_v27, 0.0  ;;  %v899_v28 = vsel %vm263_vm0, %v881_v26, 0.0 }
 0x36a   :  { %v874_v31 = vmax.f32 %v860_v24, 0.0  ;;  %900 = vadd.xlane.f32.xlu1 %v899_v28  ;;  %v896_v33 = vsel %vm263_vm0, %v880_v29, 0.0 }
 0x36b   :  { %v883_v34 = vmin.f32 %v875_v30, 1.0  ;;  %897 = vadd.xlane.f32.xlu0 %v896_v33 }
 0x36c   :  { %v882_v35 = vmin.f32 %v874_v31, 1.0 }
 0x36d   :  { %v905_v36 = vsel %vm263_vm0, %v883_v34, 0.0 }
 0x36e   :  { %906 = vadd.xlane.f32.xlu1 %v905_v36  ;;  %v902_v37 = vsel %vm263_vm0, %v882_v35, 0.0 }
 0x36f   :  { %903 = vadd.xlane.f32.xlu0 %v902_v37 }
 0x3ef   :  { %v889_v38 = vpop.xlane.xlu1 %888 }
 0x3f0   :  { %v917_v47 = vmul.f32 %v909_v42, %v889_v38  ;;  %v886_v49 = vpop.xlane.xlu0 %885 }
 0x3f1   :  { %v916_v50 = vmul.f32 %v908_v45, %v886_v49 }
 0x3f2   :  { %926 = vst.msk [vmem:[%s1423_s5 + $0x8] sm:$0xff] %vm924_vm11, %v917_v47 }
 0x3f3   :  { %925 = vst.msk [vmem:[%s1423_s5] sm:$0xff] %vm924_vm11, %v916_v50  ;;  %v895_v52 = vpop.xlane.xlu1 %894 }
 0x3f4   :  { %v919_v54 = vmul.f32 %v911_v44, %v895_v52  ;;  %v892_v55 = vpop.xlane.xlu0 %891 }
 0x3f5   :  { %v918_v56 = vmul.f32 %v910_v51, %v892_v55 }
 0x3f6   :  { %928 = vst.msk [vmem:[%s1423_s5 + $0x18] sm:$0xff] %vm924_vm11, %v919_v54 }
 0x3f7   :  { %927 = vst.msk [vmem:[%s1423_s5 + $0x10] sm:$0xff] %vm924_vm11, %v918_v56  ;;  %v901_v53 = vpop.xlane.xlu1 %900 }
 0x3f8   :  { %v921_v59 = vmul.f32 %v913_v57, %v901_v53  ;;  %v898_v60 = vpop.xlane.xlu0 %897 }
 0x3f9   :  { %v920_v61 = vmul.f32 %v912_v58, %v898_v60 }
 0x3fa   :  { %930 = vst.msk [vmem:[%s1423_s5 + $0x28] sm:$0xff] %vm924_vm11, %v921_v59 }
 0x3fb   :  { %929 = vst.msk [vmem:[%s1423_s5 + $0x20] sm:$0xff] %vm924_vm11, %v920_v61  ;;  %v907_v0 = vpop.xlane.xlu1 %906 }
 0x3fc   :  { %v923_v1 = vmul.f32 %v915_v62, %v907_v0  ;;  %v904_v2 = vpop.xlane.xlu0 %903 }
 0x3fd   :  { %v922_v3 = vmul.f32 %v914_v63, %v904_v2 }
 0x3fe   :  { %932 = vst.msk [vmem:[%s1423_s5 + $0x38] sm:$0xff] %vm924_vm11, %v923_v1 }
 0x3ff   :  { %931 = vst.msk [vmem:[%s1423_s5 + $0x30] sm:$0xff] %vm924_vm11, %v922_v3 }

</bundles_post_ra>
